<compile_context>
chip_gen: v7x
topology: tpu7x:2x2x1
jax: 0.10.0
libtpu: 0.0.40
codegen_flags: <defaults>
</compile_context>

<pallas_src>
import functools

import jax
import jax.numpy as jnp
from jax.experimental import pallas as pl
from jax.experimental.pallas import tpu as pltpu

_BN_EPS = 1e-5
_LANE = 128
_MAX_TM = 8192


def _round_up(x, m):
    return (x + m - 1) // m * m


def _vmem_limit_bytes():
    try:
        info = pltpu.get_tpu_info()
        cap = int(getattr(info, "vmem_capacity_bytes", 64 * 1024 * 1024))
    except Exception:
        cap = 64 * 1024 * 1024
    # ~96 MiB on 128-MiB parts (v5e/v6e), ~48 MiB on v7x (64-MiB physical VMEM).
    return int(min(96 * 1024 * 1024, max(32 * 1024 * 1024, (cap * 3) // 4)))


_VMEM_LIMIT = _vmem_limit_bytes()


def _choose_tm(M, K, N, out_bytes):
    """Lane-tile size: multiple of 128, divides the lane extent when possible (no tail
    padding), fits the double-buffered streaming working set, and leaves >=2 grid
    steps for v7x's two TensorCores whenever it can."""
    mp = _round_up(M, _LANE)
    per_col = 2 * (2 * K + out_bytes * N) + 8          # double-buffered col + out bytes/column
    cap = max(_LANE, ((_VMEM_LIMIT // 2) // per_col) // _LANE * _LANE)
    qmax = max(1, min(_MAX_TM, cap) // _LANE)
    q = mp // _LANE
    d = 1
    for cand in range(min(q, qmax), 0, -1):            # largest divisor of q that fits
        if q % cand == 0:
            d = cand
            break
    if d == q and q >= 2 and q % 2 == 0:
        d = q // 2                                     # >=2 parallel steps (dual-TC v7x)
    tm = d * _LANE
    if tm < 4 * _LANE and q > 8 * (tm // _LANE) and qmax >= 4:
        # prime-ish lane extents: prefer bigger tiles + a one-off tail pad over 128-wide tiles
        tm = min(qmax, q // 2) * _LANE
    return tm


# --------------------------------------------------------------------------
# Pallas kernel: out = [relu](W @ col + bias), bf16 operands, f32 accumulate
# --------------------------------------------------------------------------
def _matmul_fused_kernel(w_ref, col_ref, b_ref, o_ref, *, relu):
    acc = jnp.dot(w_ref[...], col_ref[...], preferred_element_type=jnp.float32)
    acc = acc + b_ref[...]
    if relu:
        acc = jnp.maximum(acc, 0.0)
    o_ref[...] = acc.astype(o_ref.dtype)


def matmul_fused(w, col, bias, *, relu, out_dtype=jnp.bfloat16):
    """act(w @ col + bias), tiled & pipelined over the lane (M) axis.

    w    : (N, K) float -> bf16 MXU operand (grid-invariant block)
    col  : (K, M) bf16  -> streamed lane tiles (spatial on lanes)
    bias : (N,)   f32
    out  : (N, M) out_dtype (bf16 for intermediate layers, f32 for the prob head)
    """
    N, K = w.shape
    K2, M = col.shape
    assert K == K2
    out_bytes = jnp.dtype(out_dtype).itemsize
    tm = _choose_tm(M, K, N, out_bytes)
    Mp = _round_up(M, tm)

    wb = w.astype(jnp.bfloat16)
    colb = col.astype(jnp.bfloat16)
    if Mp != M:                                        # only small non-aligned levels
        colb = jnp.pad(colb, ((0, 0), (0, Mp - M)))
    b2 = bias.astype(jnp.float32).reshape(N, 1)

    grid = (Mp // tm,)
    flops = 2 * int(N) * int(K) * int(Mp)
    bytes_accessed = int(N * K * 2 + K * Mp * 2 + N * 4 + N * Mp * out_bytes)
    out = pl.pallas_call(
        functools.partial(_matmul_fused_kernel, relu=relu),
        out_shape=jax.ShapeDtypeStruct((N, Mp), out_dtype),
        grid=grid,
        in_specs=[
            pl.BlockSpec((N, K), lambda m: (0, 0)),    # grid-invariant weights (no re-DMA)
            pl.BlockSpec((K, tm), lambda m: (0, m)),   # streamed col tiles
            pl.BlockSpec((N, 1), lambda m: (0, 0)),    # grid-invariant bias
        ],
        out_specs=pl.BlockSpec((N, tm), lambda m: (0, m)),
        compiler_params=pltpu.CompilerParams(
            dimension_semantics=("parallel",),
            vmem_limit_bytes=_VMEM_LIMIT),
        cost_estimate=pl.CostEstimate(flops=flops, transcendentals=0,
                                      bytes_accessed=bytes_accessed),
    )(wb, colb, b2)
    if Mp != M:
        out = out[:, :M]
    return out


# --------------------------------------------------------------------------
# im2col glue (XLA data movement) — feature maps live in (C, B, H, W) bf16
# --------------------------------------------------------------------------
def _im2col_cnhw(x, ksize, stride, pad):
    """x: (C, B, H, W) -> col (ksize*ksize*C, B*Ho*Wo); rows tap-major, channel-minor."""
    C, B, H, W = x.shape
    xp = jnp.pad(x, ((0, 0), (0, 0), (pad, pad), (pad, pad)))
    Ho = (H + 2 * pad - ksize) // stride + 1
    Wo = (W + 2 * pad - ksize) // stride + 1
    rows = []
    for kh in range(ksize):
        for kw in range(ksize):
            patch = jax.lax.slice(
                xp, (0, 0, kh, kw),
                (C, B, kh + (Ho - 1) * stride + 1, kw + (Wo - 1) * stride + 1),
                (1, 1, stride, stride))
            rows.append(patch.reshape(C, B * Ho * Wo))
    return jnp.concatenate(rows, axis=0), (B, Ho, Wo)


# --------------------------------------------------------------------------
# Layers
# --------------------------------------------------------------------------
def conv_bn_relu(x, p, stride):
    """ConvBnReLU = Conv2d(k=3, pad=1, bias=False) + BatchNorm2d(eval) + ReLU, BN folded."""
    scale = p["gamma"] * jax.lax.rsqrt(p["var"] + _BN_EPS)
    bias = p["beta"] - p["mean"] * scale
    w = p["w"] * scale[:, None, None, None]                        # (Cout, Cin, 3, 3)
    cout, cin = w.shape[:2]
    w_mat = jnp.transpose(w, (0, 2, 3, 1)).reshape(cout, 9 * cin)  # tap-major columns
    col, (B, Ho, Wo) = _im2col_cnhw(x, 3, stride, 1)
    y = matmul_fused(w_mat, col, bias, relu=True, out_dtype=jnp.bfloat16)
    return y.reshape(cout, B, Ho, Wo)


def conv_bias(x, w, b):
    """Plain Conv2d(k=3, s=1, pad=1) + bias (the `prob` head, no activation) -> f32."""
    cout, cin = w.shape[:2]
    w_mat = jnp.transpose(w, (0, 2, 3, 1)).reshape(cout, 9 * cin)
    col, (B, Ho, Wo) = _im2col_cnhw(x, 3, 1, 1)
    y = matmul_fused(w_mat, col, b, relu=False, out_dtype=jnp.float32)
    return y.reshape(cout, B, Ho, Wo)


def deconv_bn_relu_add(x, p, residual):
    """ConvTranspose2d(k=3,s=2,p=1,op=1,bias=False)+BN+ReLU via the 4-phase sub-pixel
    decomposition (one matmul), then post-ReLU skip add fused by XLA with the
    phase de-interleave (no residual staging buffer, no in-kernel residual read)."""
    scale = p["gamma"] * jax.lax.rsqrt(p["var"] + _BN_EPS)
    bias = p["beta"] - p["mean"] * scale
    w = p["w"] * scale[None, :, None, None]                        # (Cin, Cout, 3, 3)
    cin, cout = w.shape[:2]

    # Output phase (a,b) at input tap (di,dj) uses kernel element
    # (ky, kx) = (a+1-2*di, b+1-2*dj) when it falls inside the 3x3 kernel.
    w_big = jnp.zeros((4 * cout, 4 * cin), jnp.float32)
    for a in range(2):
        for b in range(2):
            ph = a * 2 + b
            for di in range(2):
                for dj in range(2):
                    ky, kx = a + 1 - 2 * di, b + 1 - 2 * dj
                    if 0 <= ky <= 2 and 0 <= kx <= 2:
                        t = di * 2 + dj
                        w_big = w_big.at[ph * cout:(ph + 1) * cout,
                                         t * cin:(t + 1) * cin].set(w[:, :, ky, kx].T)
    bias_big = jnp.tile(bias, 4)

    Cin, B, H, W = x.shape
    xp = jnp.pad(x, ((0, 0), (0, 0), (0, 1), (0, 1)))
    col = jnp.concatenate(
        [xp[:, :, di:di + H, dj:dj + W].reshape(Cin, B * H * W)
         for di in range(2) for dj in range(2)], axis=0)           # (4*Cin, M)

    y = matmul_fused(w_big, col, bias_big, relu=True, out_dtype=jnp.bfloat16)
    y = y.reshape(2, 2, cout, B, H, W)
    y = jnp.transpose(y, (2, 3, 4, 0, 5, 1)).reshape(cout, B, 2 * H, 2 * W)
    # post-ReLU skip connection, computed in f32 and stored bf16 for the next layer
    return (y.astype(jnp.float32) + residual.astype(jnp.float32)).astype(jnp.bfloat16)


# --------------------------------------------------------------------------
# CostRegNet2D forward
# --------------------------------------------------------------------------
def cost_reg_net_2d(x, params):
    """x: (B, C, H, W) NCHW f32 -> (B, C, H, W) f32."""
    h = jnp.transpose(x, (1, 0, 2, 3)).astype(jnp.bfloat16)        # internal (C, B, H, W)
    conv0 = conv_bn_relu(h, params["conv0"], 1)
    conv2 = conv_bn_relu(conv_bn_relu(conv0, params["conv1"], 2), params["conv2"], 1)
    conv4 = conv_bn_relu(conv_bn_relu(conv2, params["conv3"], 2), params["conv4"], 1)
    y = conv_bn_relu(conv_bn_relu(conv4, params["conv5"], 2), params["conv6"], 1)
    y = deconv_bn_relu_add(y, params["conv7"], conv4)              # conv4 + conv7(y)
    y = deconv_bn_relu_add(y, params["conv9"], conv2)              # conv2 + conv9(y)
    y = deconv_bn_relu_add(y, params["conv11"], conv0)             # conv0 + conv11(y)
    y = conv_bias(y, params["prob"]["w"], params["prob"]["b"])
    return jnp.transpose(y, (1, 0, 2, 3))


# --------------------------------------------------------------------------
# Plain-JAX f32 reference (for numerical validation)
# --------------------------------------------------------------------------
def _conv_ref(x, w, stride):
    return jax.lax.conv_general_dilated(
        x, w, (stride, stride), ((1, 1), (1, 1)),
        dimension_numbers=("NCHW", "OIHW", "NCHW"))


def _deconv_ref(x, w_t):
    w = jnp.transpose(w_t, (1, 0, 2, 3))[:, :, ::-1, ::-1]
    return jax.lax.conv_general_dilated(
        x, w, (1, 1), ((1, 2), (1, 2)), lhs_dilation=(2, 2),
        dimension_numbers=("NCHW", "OIHW", "NCHW"))


def _bn_relu_ref(x, p):
    scale = (p["gamma"] / jnp.sqrt(p["var"] + _BN_EPS))[None, :, None, None]
    y = (x - p["mean"][None, :, None, None]) * scale + p["beta"][None, :, None, None]
    return jnp.maximum(y, 0.0)


def cost_reg_net_2d_ref(x, p):
    def cbr(h, pp, s):
        return _bn_relu_ref(_conv_ref(h, pp["w"], s), pp)

    def dcbr(h, pp):
        return _bn_relu_ref(_deconv_ref(h, pp["w"]), pp)

    conv0 = cbr(x, p["conv0"], 1)
    conv2 = cbr(cbr(conv0, p["conv1"], 2), p["conv2"], 1)
    conv4 = cbr(cbr(conv2, p["conv3"], 2), p["conv4"], 1)
    y = cbr(cbr(conv4, p["conv5"], 2), p["conv6"], 1)
    y = conv4 + dcbr(y, p["conv7"])
    y = conv2 + dcbr(y, p["conv9"])
    y = conv0 + dcbr(y, p["conv11"])
    return _conv_ref(y, p["prob"]["w"], 1) + p["prob"]["b"][None, :, None, None]


# --------------------------------------------------------------------------
# Deterministic parameter init (synthetic, no checkpoint)
# --------------------------------------------------------------------------
def init_params(key, c):
    keys = iter(jax.random.split(key, 64))

    def w(shape, s=0.08):
        return jax.random.normal(next(keys), shape, jnp.float32) * s

    def bn(ch):
        return dict(
            gamma=1.0 + 0.1 * jax.random.normal(next(keys), (ch,), jnp.float32),
            beta=0.05 * jax.random.normal(next(keys), (ch,), jnp.float32),
            mean=0.05 * jax.random.normal(next(keys), (ch,), jnp.float32),
            var=1.0 + 0.1 * jnp.abs(jax.random.normal(next(keys), (ch,), jnp.float32)),
        )

    def cbr(cin, cout):                 # Conv2d (Cout, Cin, 3, 3), bias=False, + BN
        return dict(w=w((cout, cin, 3, 3)), **bn(cout))

    def dcbr(cin, cout):                # ConvTranspose2d (Cin, Cout, 3, 3), bias=False, + BN
        return dict(w=w((cin, cout, 3, 3)), **bn(cout))

    return {
        "conv0": cbr(c, c), "conv1": cbr(c, c), "conv2": cbr(c, c),
        "conv3": cbr(c, c), "conv4": cbr(c, c), "conv5": cbr(c, c),
        "conv6": cbr(c, c),
        "conv7": dcbr(c, c), "conv9": dcbr(c, c), "conv11": dcbr(c, c),
        "prob": dict(w=w((c, c, 3, 3)), b=w((c,), 0.02)),
    }


# --------------------------------------------------------------------------
if __name__ == "__main__":
    key = jax.random.PRNGKey(0)
    B, C, H, W = 2, 4, 16, 16
    kx, kp = jax.random.split(key)
    x = jax.random.normal(kx, (B, C, H, W), jnp.float32) * 0.5
    params = init_params(kp, C)

    fwd = jax.jit(cost_reg_net_2d)
    y = jax.block_until_ready(fwd(x, params))

    assert y.shape == (B, C, H, W)
    assert bool(jnp.all(jnp.isfinite(y)))

    y_ref = jax.block_until_ready(jax.jit(cost_reg_net_2d_ref)(x, params))
    err = float(jnp.max(jnp.abs(y - y_ref)))
    ref_scale = float(jnp.max(jnp.abs(y_ref))) + 1e-3
    assert err / ref_scale < 0.1, f"mismatch vs reference: max_abs_err={err}, scale={ref_scale}"

    print("KERNEL_OK")
</pallas_src>

<mosaic_0001>
module attributes {stable_mosaic.version = 11 : i64} {
  func.func @_matmul_fused_kernel(%arg0: i32, %arg1: memref<4x36xbf16, #tpu.memory_space<vmem>>, %arg2: memref<36x256xbf16, #tpu.memory_space<vmem>>, %arg3: memref<4x1xf32, #tpu.memory_space<vmem>>, %arg4: memref<4x256xbf16, #tpu.memory_space<vmem>>) attributes {dimension_semantics = [#tpu.dimension_semantics<parallel>], iteration_bounds = array<i64: 2>, scalar_prefetch = 0 : i64, scratch_operands = 0 : i64, tpu.core_type = #tpu.core_type<tc>, window_params = [{pipeline_mode = #tpu.pipeline_mode<synchronous>, transform_indices = @transform_0, window_bounds = array<i64: 4, 36>}, {transform_indices = @transform_1, window_bounds = array<i64: 36, 256>}, {pipeline_mode = #tpu.pipeline_mode<synchronous>, transform_indices = @transform_2, window_bounds = array<i64: 4, 1>}, {transform_indices = @transform_3, window_bounds = array<i64: 4, 256>}]} {
    %c0 = arith.constant 0 : index
    %c0_0 = arith.constant 0 : index
    %0 = vector.load %arg1[%c0, %c0_0] : memref<4x36xbf16, #tpu.memory_space<vmem>>, vector<4x36xbf16>
    %c0_1 = arith.constant 0 : index
    %c0_2 = arith.constant 0 : index
    %1 = vector.load %arg2[%c0_1, %c0_2] : memref<36x256xbf16, #tpu.memory_space<vmem>>, vector<36x256xbf16>
    %cst = arith.constant dense<0.000000e+00> : vector<4x256xf32>
    %2 = tpu.matmul %0, %1, %cst {dimension_numbers = #tpu.dot_dimension_numbers<[1], [0], [0], [1], [0, 0, 1, 1], [], []>} : vector<4x36xbf16>, vector<36x256xbf16>, vector<4x256xf32> -> vector<4x256xf32>
    %c0_3 = arith.constant 0 : index
    %c0_4 = arith.constant 0 : index
    %3 = vector.load %arg3[%c0_3, %c0_4] : memref<4x1xf32, #tpu.memory_space<vmem>>, vector<4x1xf32>
    %4 = vector.broadcast %3 : vector<4x1xf32> to vector<4x256xf32>
    %5 = arith.addf %2, %4 : vector<4x256xf32>
    %cst_5 = arith.constant 0.000000e+00 : f32
    %6 = vector.broadcast %cst_5 : f32 to vector<4x256xf32>
    %7 = arith.maximumf %5, %6 : vector<4x256xf32>
    %8 = arith.truncf %7 : vector<4x256xf32> to vector<4x256xbf16>
    %c0_6 = arith.constant 0 : index
    %c0_7 = arith.constant 0 : index
    %9 = vector.load %arg4[%c0_6, %c0_7] : memref<4x256xbf16, #tpu.memory_space<vmem>>, vector<4x256xbf16>
    tpu.vector_store %arg4[%c0_6, %c0_7], %8 {strides = array<i32>} : memref<4x256xbf16, #tpu.memory_space<vmem>>, vector<4x256xbf16>,
    return
  }
  func.func @transform_0(%arg0: i32) -> (i32, i32) {
    %c0_i32 = arith.constant 0 : i32
    %c0_i32_0 = arith.constant 0 : i32
    %c0_i32_1 = arith.constant 0 : i32
    return %c0_i32, %c0_i32_0 : i32, i32
  }
  func.func @transform_1(%arg0: i32) -> (i32, i32) {
    %c0_i32 = arith.constant 0 : i32
    %c0_i32_0 = arith.constant 0 : i32
    return %c0_i32, %arg0 : i32, i32
  }
  func.func @transform_2(%arg0: i32) -> (i32, i32) {
    %c0_i32 = arith.constant 0 : i32
    %c0_i32_0 = arith.constant 0 : i32
    %c0_i32_1 = arith.constant 0 : i32
    return %c0_i32, %c0_i32_0 : i32, i32
  }
  func.func @transform_3(%arg0: i32) -> (i32, i32) {
    %c0_i32 = arith.constant 0 : i32
    %c0_i32_0 = arith.constant 0 : i32
    return %c0_i32, %arg0 : i32, i32
  }
}

module attributes {stable_mosaic.version = 11 : i64} {
  func.func @_matmul_fused_kernel(%arg0: i32, %arg1: memref<4x36xbf16, #tpu.memory_space<vmem>>, %arg2: memref<36x128xbf16, #tpu.memory_space<vmem>>, %arg3: memref<4x1xf32, #tpu.memory_space<vmem>>, %arg4: memref<4x128xbf16, #tpu.memory_space<vmem>>) attributes {dimension_semantics = [#tpu.dimension_semantics<parallel>], iteration_bounds = array<i64: 1>, scalar_prefetch = 0 : i64, scratch_operands = 0 : i64, tpu.core_type = #tpu.core_type<tc>, window_params = [{pipeline_mode = #tpu.pipeline_mode<synchronous>, transform_indices = @transform_0, window_bounds = array<i64: 4, 36>}, {transform_indices = @transform_1, window_bounds = array<i64: 36, 128>}, {pipeline_mode = #tpu.pipeline_mode<synchronous>, transform_indices = @transform_2, window_bounds = array<i64: 4, 1>}, {transform_indices = @transform_3, window_bounds = array<i64: 4, 128>}]} {
    %c0 = arith.constant 0 : index
    %c0_0 = arith.constant 0 : index
    %0 = vector.load %arg1[%c0, %c0_0] : memref<4x36xbf16, #tpu.memory_space<vmem>>, vector<4x36xbf16>
    %c0_1 = arith.constant 0 : index
    %c0_2 = arith.constant 0 : index
    %1 = vector.load %arg2[%c0_1, %c0_2] : memref<36x128xbf16, #tpu.memory_space<vmem>>, vector<36x128xbf16>
    %cst = arith.constant dense<0.000000e+00> : vector<4x128xf32>
    %2 = tpu.matmul %0, %1, %cst {dimension_numbers = #tpu.dot_dimension_numbers<[1], [0], [0], [1], [0, 0, 1, 1], [], []>} : vector<4x36xbf16>, vector<36x128xbf16>, vector<4x128xf32> -> vector<4x128xf32>
    %c0_3 = arith.constant 0 : index
    %c0_4 = arith.constant 0 : index
    %3 = vector.load %arg3[%c0_3, %c0_4] : memref<4x1xf32, #tpu.memory_space<vmem>>, vector<4x1xf32>
    %4 = vector.broadcast %3 : vector<4x1xf32> to vector<4x128xf32>
    %5 = arith.addf %2, %4 : vector<4x128xf32>
    %cst_5 = arith.constant 0.000000e+00 : f32
    %6 = vector.broadcast %cst_5 : f32 to vector<4x128xf32>
    %7 = arith.maximumf %5, %6 : vector<4x128xf32>
    %8 = arith.truncf %7 : vector<4x128xf32> to vector<4x128xbf16>
    %c0_6 = arith.constant 0 : index
    %c0_7 = arith.constant 0 : index
    %9 = vector.load %arg4[%c0_6, %c0_7] : memref<4x128xbf16, #tpu.memory_space<vmem>>, vector<4x128xbf16>
    tpu.vector_store %arg4[%c0_6, %c0_7], %8 {strides = array<i32>} : memref<4x128xbf16, #tpu.memory_space<vmem>>, vector<4x128xbf16>,
    return
  }
  func.func @transform_0(%arg0: i32) -> (i32, i32) {
    %c0_i32 = arith.constant 0 : i32
    %c0_i32_0 = arith.constant 0 : i32
    %c0_i32_1 = arith.constant 0 : i32
    return %c0_i32, %c0_i32_0 : i32, i32
  }
  func.func @transform_1(%arg0: i32) -> (i32, i32) {
    %c0_i32 = arith.constant 0 : i32
    %c0_i32_0 = arith.constant 0 : i32
    return %c0_i32, %arg0 : i32, i32
  }
  func.func @transform_2(%arg0: i32) -> (i32, i32) {
    %c0_i32 = arith.constant 0 : i32
    %c0_i32_0 = arith.constant 0 : i32
    %c0_i32_1 = arith.constant 0 : i32
    return %c0_i32, %c0_i32_0 : i32, i32
  }
  func.func @transform_3(%arg0: i32) -> (i32, i32) {
    %c0_i32 = arith.constant 0 : i32
    %c0_i32_0 = arith.constant 0 : i32
    return %c0_i32, %arg0 : i32, i32
  }
}

module attributes {stable_mosaic.version = 11 : i64} {
  func.func @_matmul_fused_kernel(%arg0: i32, %arg1: memref<16x16xbf16, #tpu.memory_space<vmem>>, %arg2: memref<16x128xbf16, #tpu.memory_space<vmem>>, %arg3: memref<16x1xf32, #tpu.memory_space<vmem>>, %arg4: memref<16x128xbf16, #tpu.memory_space<vmem>>) attributes {dimension_semantics = [#tpu.dimension_semantics<parallel>], iteration_bounds = array<i64: 1>, scalar_prefetch = 0 : i64, scratch_operands = 0 : i64, tpu.core_type = #tpu.core_type<tc>, window_params = [{pipeline_mode = #tpu.pipeline_mode<synchronous>, transform_indices = @transform_0, window_bounds = array<i64: 16, 16>}, {transform_indices = @transform_1, window_bounds = array<i64: 16, 128>}, {pipeline_mode = #tpu.pipeline_mode<synchronous>, transform_indices = @transform_2, window_bounds = array<i64: 16, 1>}, {transform_indices = @transform_3, window_bounds = array<i64: 16, 128>}]} {
    %c0 = arith.constant 0 : index
    %c0_0 = arith.constant 0 : index
    %0 = vector.load %arg1[%c0, %c0_0] : memref<16x16xbf16, #tpu.memory_space<vmem>>, vector<16x16xbf16>
    %c0_1 = arith.constant 0 : index
    %c0_2 = arith.constant 0 : index
    %1 = vector.load %arg2[%c0_1, %c0_2] : memref<16x128xbf16, #tpu.memory_space<vmem>>, vector<16x128xbf16>
    %cst = arith.constant dense<0.000000e+00> : vector<16x128xf32>
    %2 = tpu.matmul %0, %1, %cst {dimension_numbers = #tpu.dot_dimension_numbers<[1], [0], [0], [1], [0, 0, 1, 1], [], []>} : vector<16x16xbf16>, vector<16x128xbf16>, vector<16x128xf32> -> vector<16x128xf32>
    %c0_3 = arith.constant 0 : index
    %c0_4 = arith.constant 0 : index
    %3 = vector.load %arg3[%c0_3, %c0_4] : memref<16x1xf32, #tpu.memory_space<vmem>>, vector<16x1xf32>
    %4 = vector.broadcast %3 : vector<16x1xf32> to vector<16x128xf32>
    %5 = arith.addf %2, %4 : vector<16x128xf32>
    %cst_5 = arith.constant 0.000000e+00 : f32
    %6 = vector.broadcast %cst_5 : f32 to vector<16x128xf32>
    %7 = arith.maximumf %5, %6 : vector<16x128xf32>
    %8 = arith.truncf %7 : vector<16x128xf32> to vector<16x128xbf16>
    %c0_6 = arith.constant 0 : index
    %c0_7 = arith.constant 0 : index
    %9 = vector.load %arg4[%c0_6, %c0_7] : memref<16x128xbf16, #tpu.memory_space<vmem>>, vector<16x128xbf16>
    tpu.vector_store %arg4[%c0_6, %c0_7], %8 {strides = array<i32>} : memref<16x128xbf16, #tpu.memory_space<vmem>>, vector<16x128xbf16>,
    return
  }
  func.func @transform_0(%arg0: i32) -> (i32, i32) {
    %c0_i32 = arith.constant 0 : i32
    %c0_i32_0 = arith.constant 0 : i32
    %c0_i32_1 = arith.constant 0 : i32
    return %c0_i32, %c0_i32_0 : i32, i32
  }
  func.func @transform_1(%arg0: i32) -> (i32, i32) {
    %c0_i32 = arith.constant 0 : i32
    %c0_i32_0 = arith.constant 0 : i32
    return %c0_i32, %arg0 : i32, i32
  }
  func.func @transform_2(%arg0: i32) -> (i32, i32) {
    %c0_i32 = arith.constant 0 : i32
    %c0_i32_0 = arith.constant 0 : i32
    %c0_i32_1 = arith.constant 0 : i32
    return %c0_i32, %c0_i32_0 : i32, i32
  }
  func.func @transform_3(%arg0: i32) -> (i32, i32) {
    %c0_i32 = arith.constant 0 : i32
    %c0_i32_0 = arith.constant 0 : i32
    return %c0_i32, %arg0 : i32, i32
  }
}

module attributes {stable_mosaic.version = 11 : i64} {
  func.func @_matmul_fused_kernel(%arg0: i32, %arg1: memref<4x36xbf16, #tpu.memory_space<vmem>>, %arg2: memref<36x256xbf16, #tpu.memory_space<vmem>>, %arg3: memref<4x1xf32, #tpu.memory_space<vmem>>, %arg4: memref<4x256xf32, #tpu.memory_space<vmem>>) attributes {dimension_semantics = [#tpu.dimension_semantics<parallel>], iteration_bounds = array<i64: 2>, scalar_prefetch = 0 : i64, scratch_operands = 0 : i64, tpu.core_type = #tpu.core_type<tc>, window_params = [{pipeline_mode = #tpu.pipeline_mode<synchronous>, transform_indices = @transform_0, window_bounds = array<i64: 4, 36>}, {transform_indices = @transform_1, window_bounds = array<i64: 36, 256>}, {pipeline_mode = #tpu.pipeline_mode<synchronous>, transform_indices = @transform_2, window_bounds = array<i64: 4, 1>}, {transform_indices = @transform_3, window_bounds = array<i64: 4, 256>}]} {
    %c0 = arith.constant 0 : index
    %c0_0 = arith.constant 0 : index
    %0 = vector.load %arg1[%c0, %c0_0] : memref<4x36xbf16, #tpu.memory_space<vmem>>, vector<4x36xbf16>
    %c0_1 = arith.constant 0 : index
    %c0_2 = arith.constant 0 : index
    %1 = vector.load %arg2[%c0_1, %c0_2] : memref<36x256xbf16, #tpu.memory_space<vmem>>, vector<36x256xbf16>
    %cst = arith.constant dense<0.000000e+00> : vector<4x256xf32>
    %2 = tpu.matmul %0, %1, %cst {dimension_numbers = #tpu.dot_dimension_numbers<[1], [0], [0], [1], [0, 0, 1, 1], [], []>} : vector<4x36xbf16>, vector<36x256xbf16>, vector<4x256xf32> -> vector<4x256xf32>
    %c0_3 = arith.constant 0 : index
    %c0_4 = arith.constant 0 : index
    %3 = vector.load %arg3[%c0_3, %c0_4] : memref<4x1xf32, #tpu.memory_space<vmem>>, vector<4x1xf32>
    %4 = vector.broadcast %3 : vector<4x1xf32> to vector<4x256xf32>
    %5 = arith.addf %2, %4 : vector<4x256xf32>
    %c0_5 = arith.constant 0 : index
    %c0_6 = arith.constant 0 : index
    %6 = vector.load %arg4[%c0_5, %c0_6] : memref<4x256xf32, #tpu.memory_space<vmem>>, vector<4x256xf32>
    tpu.vector_store %arg4[%c0_5, %c0_6], %5 {strides = array<i32>} : memref<4x256xf32, #tpu.memory_space<vmem>>, vector<4x256xf32>,
    return
  }
  func.func @transform_0(%arg0: i32) -> (i32, i32) {
    %c0_i32 = arith.constant 0 : i32
    %c0_i32_0 = arith.constant 0 : i32
    %c0_i32_1 = arith.constant 0 : i32
    return %c0_i32, %c0_i32_0 : i32, i32
  }
  func.func @transform_1(%arg0: i32) -> (i32, i32) {
    %c0_i32 = arith.constant 0 : i32
    %c0_i32_0 = arith.constant 0 : i32
    return %c0_i32, %arg0 : i32, i32
  }
  func.func @transform_2(%arg0: i32) -> (i32, i32) {
    %c0_i32 = arith.constant 0 : i32
    %c0_i32_0 = arith.constant 0 : i32
    %c0_i32_1 = arith.constant 0 : i32
    return %c0_i32, %c0_i32_0 : i32, i32
  }
  func.func @transform_3(%arg0: i32) -> (i32, i32) {
    %c0_i32 = arith.constant 0 : i32
    %c0_i32_0 = arith.constant 0 : i32
    return %c0_i32, %arg0 : i32, i32
  }
}

</mosaic_0001>

<bundles_post_ra>
// kernel: tile.23
= control target key start
LH: loop header
LB: loop body
LE: loop exit
PB: predicated region body
PF: predicated region fallthrough
CT: control target
= control target key end

     0   :  { %s22_s0 = inlined_call_operand.vmem [shape: f32[4], index: 0, kind: input, shape index: {}]   ;;  %s23_s1 = inlined_call_operand.vmem [shape: f32[4,4], index: 1, kind: output, shape index: {}]  }
   0x1   :  { %v4_v0 = vld [vmem:[%s22_s0] ss:$0 sm:$0xff] }
   0x2   :  { %5 = vst [vmem:[%s23_s1] sm:$0xf] %v4_v0 }

// kernel: tile.2
= control target key start
LH: loop header
LB: loop body
LE: loop exit
PB: predicated region body
PF: predicated region fallthrough
CT: control target
= control target key end

     0   :  { %s34_s8 = smov 125   ;;  %vm7_vm0 = vcmask 7168   ;;  %s35_s11 = smov 126   ;;  %s61_s0 = inlined_call_operand.vmem [shape: f32[4,4], index: 0, kind: input, shape index: {}]   ;;  %s62_s1 = inlined_call_operand.vmem [shape: f32[16,1], index: 1, kind: output, shape index: {}]  }
   0x1   :  { %v4_v0 = vld [vmem:[%s61_s0] sm:$0xf]  ;;  %s33_s0 = smov 127  }
   0x2   :  { %5 = vst [vmem:[#allocation0] sm:$0xf] %v4_v0 }
   0x9   :  { %v9_v1 = vld [vmem:[#allocation0] sm:$0xf]  }
   0xa   :  { %v21_v2 = vld [vmem:[#allocation0] sm:$0xf]   ;;  %10 = vrot.lane.b32.xlu0 %v9_v1, %s33_s0 }
   0xb   :  { %22 = vrot.lane.b32.xlu1 %v21_v2, %s34_s8  ;;  %v6_v3 = vld [vmem:[#allocation0] sm:$0xf]  }
   0xc   :  { %v15_v4 = vld [vmem:[#allocation0] sm:$0xf]   ;;  %8 = vst.msk [vmem:[%s62_s1] ss:$4 sm:$0xf] %vm7_vm0, %v6_v3  }
   0xe   :  { %16 = vrot.lane.b32.xlu0 %v15_v4, %s35_s11 }
  0x7c   :  { %v11_v5 = vpop.permute.xlu0 %10  }
  0x7d   :  { %v23_v6 = vpop.permute.xlu1 %22   ;;  %27 = vst.msk [vmem:[%s62_s1 + $0x1] ss:$4 sm:$0xf] %vm7_vm0, %v11_v5  }
  0x7e   :  { %29 = vst.msk [vmem:[%s62_s1 + $0x3] ss:$4 sm:$0xf] %vm7_vm0, %v23_v6  }
  0x80   :  { %v17_v7 = vpop.permute.xlu0 %16  }
  0x81   :  { %28 = vst.msk [vmem:[%s62_s1 + $0x2] ss:$4 sm:$0xf] %vm7_vm0, %v17_v7  }

// kernel: cost_reg_net_2d.11
= control target key start
LH: loop header
LB: loop body
LE: loop exit
PB: predicated region body
PF: predicated region fallthrough
CT: control target
= control target key end

     0   :  { %s495_s12 = smov 0   ;;  %s497_s13 = smov 0   ;;  %s553_s0 = inlined_call_operand.vmem [shape: bf16[4,36], index: 0, kind: input, shape index: {}]   ;;  %s554_s1 = inlined_call_operand.vmem [shape: bf16[36,512], index: 1, kind: input, shape index: {}]   ;;  %s555_s2 = inlined_call_operand.vmem [shape: f32[4,1], index: 2, kind: input, shape index: {}]   ;;  %s556_s3 = inlined_call_operand.vmem [shape: bf16[4,512], index: 3, kind: output, shape index: {}]  }
   0x1   :  { %s499_s14 = smov 0  }
   0x2 LB: > { %s392_s15 = sadd.s32 4294967295, %s472_s14   ;;  %s512_s16 = sadd.s32 1, %s472_s14   ;;  %s472_s14 = sphi %s499_s14, %s559_s14   ;;  %s468_s13 = sphi %s497_s13, %s558_s13   ;;  %s464_s12 = sphi %s495_s12, %s557_s12  }
   0x3   : > { %s38_s17 = ssub.s32 %s472_s14, %s512_s16  ;;  %s41_s18 = sadd.s32 1, %s468_s13 }
   0x4   : > { %p39_p0 = scmp.eq.s32.totalorder %s38_s17, 0  ;;  %p48_p1 = scmp.ne.s32.totalorder %s468_s13, %s464_s12 }
   0x5   : > { %p49_p2 = scmp.eq.s32.totalorder %s472_s14, 0  ;;  %p395_p4 = scmp.ge.s32.totalorder %s472_s14, 2 }
   0x6   : > { %s521_s19 = scalar_select %p39_p0, %s468_s13, %s41_s18  }
   0x7   : > { %p50_p3 = por %p49_p2, %p48_p1  ;;  %127 = sbr.rel (%p395_p4) target bundleno = 21 (0x15), region = 24 }
   0xe   : > { %130 = sbr.rel (!%p50_p3) target bundleno = 21 (0x15), region = 28  ;;  %s132_s20 = sand.u32 (%p50_p3), 1, %s468_s13  }
   0xf   : > { %s413_s21 = sshll.u32 (%p50_p3), %s472_s14, 3  ;;  %s414_s22 = smul.u32 (%p50_p3), 40, %s132_s20 }
  0x10   : > { %s137_s25 = scalar_lea.vmem (%p50_p3), %s554_s1, %s413_s21 }
  0x11   : > { %v173_v0 = vld [vmem:[%s137_s25] sm:$0xff] (%p50_p3)  ;;  %v175_v1 = vld [vmem:[%s137_s25 + $0x10] sm:$0xff] (%p50_p3)  ;;  %s134_s26 = scalar_lea.vmem (%p50_p3), [#allocation2], %s414_s22 }
  0x12   : > { %v177_v2 = vld [vmem:[%s137_s25 + $0x20] sm:$0xff] (%p50_p3)  ;;  %v179_v3 = vld [vmem:[%s137_s25 + $0x30] sm:$0xff] (%p50_p3)  ;;  %174 = vst [vmem:[%s134_s26] sm:$0xff] (%p50_p3), %v173_v0  ;;  %176 = vst [vmem:[%s134_s26 + $0x8] sm:$0xff] (%p50_p3), %v175_v1 }
  0x13   : > { %v181_v4 = vld [vmem:[%s137_s25 + $0x40] sm:$0xff] (%p50_p3)  ;;  %178 = vst [vmem:[%s134_s26 + $0x10] sm:$0xff] (%p50_p3), %v177_v2  ;;  %180 = vst [vmem:[%s134_s26 + $0x18] sm:$0xff] (%p50_p3), %v179_v3 }
  0x14   : > { %182 = vst [vmem:[%s134_s26 + $0x20] sm:$0xff] (%p50_p3), %v181_v4 }
  0x15 PF: > { %p398_p5 = scmp.ge.s32.totalorder %s472_s14, 1  ;;  %p187_p6 = scmp.lt.s32.totalorder %s472_s14, 3 }
  0x17   : > { %p188_p7 = pnand %p398_p5, %p187_p6 }
  0x18   : > { %s194_s27 = sand.u32 (!%p188_p7), 1, %s464_s12   ;;  %v474_v5 = vmov (!%p188_p7), 0   ;;  %v231_v6 = vld [vmem:[%s555_s2] sm:$0xf] (!%p188_p7)  ;;  %vm266_vm0 = vcmask (!%p188_p7), 1041408   ;;  %vm262_vm1 = vcmask (!%p188_p7), 293888  }
  0x19   : > { %191 = sbr.rel (%p188_p7) target bundleno = 262 (0x106), region = 66  ;;  %305 = vmatprep.mubr.bf16.mxu0 (!%p188_p7), %v474_v5  ;;  %441 = vset.pattern.permute.xlu0 (!%p188_p7), %v474_v5  ;;  %v225_v15 = vld [vmem:[%s553_s0] sm:$0x3] (!%p188_p7)  ;;  %s399_s7 = sshll.u32 (!%p188_p7), %s392_s15, 1 }
  0x1a   : > { %s415_s28 = smul.u32 (!%p188_p7), 40, %s194_s27  ;;  %234 = vperm.xlu0 (!%p188_p7), %441, %v231_v6   ;;  %p219_p8 = scmp.lt.s32.totalorder (!%p188_p7), %s399_s7, 3 }
  0x1c   : > { %s196_s4 = scalar_lea.vmem (!%p188_p7), [#allocation2], %s415_s28 }
  0x1d   : > { %v442_v7 = vld [vmem:[%s196_s4 + $0x4] ss:$8 sps:$4 sm:$0xff] (!%p188_p7)   ;;  %v444_v8 = vld [vmem:[%s196_s4] ss:$8 sps:$4 sm:$0xff] (!%p188_p7)   ;;  %v445_v9 = vld [vmem:[%s196_s4 + $0x14] ss:$8 sps:$4 sm:$0xff] (!%p188_p7)  }
  0x1e   : > { %273 = vmatprep.subr.bf16.mxu0 (!%p188_p7), %v442_v7  ;;  %v230_v10 = vld [vmem:[%s196_s4 + $0x20] sm:$0x33] (!%p188_p7)  ;;  %v447_v11 = vld [vmem:[%s196_s4 + $0x10] ss:$8 sps:$4 sm:$0xff] (!%p188_p7)  }
  0x1f   : > { %274 = vmatpush1.bf16.msra.mxu0 (!%p188_p7), %v444_v8  ;;  %v406_v12 = vcombine.high (!%p188_p7), %v230_v10, %v230_v10  ;;  %v405_v13 = vcombine.low (!%p188_p7), %v230_v10, %v230_v10 }
  0x20   : > { %275 = vmatprep.subr.bf16.mxu0 %v445_v9  ;;  %s561_s7 = smov (!%p219_p8, %s399_s7), 3 }
  0x21   : > { %v268_v14 = vsel %vm266_vm0, %v405_v13, 0  ;;  %s400_s8 = sshll.u32 %s561_s7, 1 }
  0x22   : > { %s222_s11 = scalar_lea.vmem %s556_s3, %s400_s8 }
  0x23   : > { %276 = vmatpush1.bf16.msra.mxu0 %v447_v11 }
  0x24   : > { %407 = vmatprep.subr.msk.bf16.mxu0 %vm266_vm0, %v406_v12 }
  0x27   : > { %278 = vmatpush1.bf16.msra.mxu0 %v268_v14 }
  0x2a   : > { %408 = vmatmul.mubr.msk.bf16.vlgmr.msra.gmra.mrb[0].mxu0 %vm262_vm1, %v225_v15 }
  0x99   : > { %v235_v16 = vpop.permute.xlu0 %234 }
  0xfd   : > { %v307_v17 = vpop.f32.mrb[0].mxu0 }
  0xfe   : > { %v308_v18 = vadd.f32 %v307_v17, %v235_v16  ;;  %v309_v19 = vpop.f32.mrb[1].mxu0 }
  0xff   : > { %v310_v20 = vadd.f32 %v309_v19, %v235_v16  ;;  %v311_v21 = vpop.f32.mrb[2].mxu0 }
 0x100   : > { %v314_v22 = vmax.f32 %v308_v18, 0.0  ;;  %v312_v23 = vpop.f32.mrb[3].mxu0 }
 0x101   : > { %v315_v24 = vmax.f32 %v310_v20, 0.0 }
 0x103   : > { %v409_v25 = vpack.c.bf16 %v315_v24, %v314_v22 }
 0x105   : > { %410 = vst.sshfl [vmem:[%s222_s11] sm:$0x33 pattern:$0x76325410] %v409_v25 }
 0x106 PF: > { %p10_p9 = scmp.ge.s32.totalorder %s512_s16, 4   ;;  %s557_s12 = smov %s468_s13 }
 0x107   : > { %s558_s13 = smov %s521_s19  ;;  %s559_s14 = smov %s512_s16 }
 0x108   :  { %12 = sbr.rel (!%p10_p9) target bundleno = 2 (0x2), region = 105 }

// kernel: cost_reg_net_2d.12
= control target key start
LH: loop header
LB: loop body
LE: loop exit
PB: predicated region body
PF: predicated region fallthrough
CT: control target
= control target key end

     0   :  { %v122_v0 = vmov 0.0   ;;  %vm123_vm0 = vmmov 0   ;;  %v124_v2 = vmov 0   ;;  %vm46_vm1 = vcmask 1041408   ;;  %s163_s1 = inlined_call_operand.vmem [shape: bf16[36,128], index: 1, kind: input, shape index: {}]   ;;  %s164_s2 = inlined_call_operand.vmem [shape: f32[4,1], index: 2, kind: input, shape index: {}]   ;;  %s165_s0 = inlined_call_operand.vmem [shape: bf16[4,36], index: 0, kind: input, shape index: {}]   ;;  %s166_s3 = inlined_call_operand.vmem [shape: bf16[4,128], index: 3, kind: output, shape index: {}]  }
   0x1   :  { %105 = vmatprep.subr.bf16.mxu0 %v122_v0  ;;  %v119_v1 = vld [vmem:[%s163_s1] sm:$0xff]   ;;  %111 = vmatprep.mubr.msk.bf16.mxu0 %vm123_vm0, %v122_v0  ;;  %v120_v3 = vld [vmem:[%s163_s1 + $0x8] sm:$0xff]   ;;  %v121_v4 = vld [vmem:[%s163_s1 + $0x10] ss:$0 sps:$4 sm:$0x33]   ;;  %vm42_vm2 = vcmask 293888  }
   0x2   :  { %118 = vset.pattern.permute.xlu0 %v124_v2  ;;  %106 = vmatpush3.bf16.msra.mxu0 %v119_v1  ;;  %v21_v5 = vld [vmem:[%s164_s2] sm:$0xf]  ;;  %v48_v6 = vsel %vm46_vm1, %v121_v4, 0 }
   0x3   :  { %107 = vmatprep.subr.bf16.mxu0 %v122_v0  ;;  %24 = vperm.xlu0 %118, %v21_v5   ;;  %v15_v7 = vld [vmem:[%s165_s0] sm:$0x3] }
   0x6   :  { %108 = vmatpush3.bf16.msra.mxu0 %v120_v3 }
   0x7   :  { %109 = vmatprep.subr.bf16.mxu0 %v122_v0 }
   0xa   :  { %110 = vmatpush3.bf16.msra.mxu0 %v48_v6 }
   0xd   :  { %112 = vmatmul.mubr.msk.bf16.vlgmr.msra.gmra.mrb[0].mxu0 %vm42_vm2, %v15_v7 }
  0x82   :  { %v25_v8 = vpop.permute.xlu0 %24 }
  0xe0   :  { %v84_v9 = vpop.f32.mrb[0].mxu0 }
  0xe1   :  { %v85_v10 = vadd.f32 %v84_v9, %v25_v8  ;;  %v113_v11 = vpop.f32.mrb[1].mxu0 }
  0xe2   :  { %v87_v12 = vpop.f32.mrb[2].mxu0 }
  0xe3   :  { %v90_v13 = vmax.f32 %v85_v10, 0.0  ;;  %v114_v14 = vpop.f32.mrb[3].mxu0 }
  0xe5   :  { %v91_v15 = vpack.c.bf16 %v90_v13, %v90_v13 }
  0xe7   :  { %92 = vst [vmem:[%s166_s3] sm:$0x3] %v91_v15 }

// kernel: cost_reg_net_2d.18
= control target key start
LH: loop header
LB: loop body
LE: loop exit
PB: predicated region body
PF: predicated region fallthrough
CT: control target
= control target key end

     0   :  { %v129_v0 = vmov 0.0   ;;  %vm130_vm0 = vmmov 0   ;;  %v131_v3 = vmov 0   ;;  %vm42_vm1 = vcmask 130048   ;;  %s167_s1 = inlined_call_operand.vmem [shape: bf16[16,128], index: 1, kind: input, shape index: {}]   ;;  %s168_s0 = inlined_call_operand.vmem [shape: bf16[16,16], index: 0, kind: input, shape index: {}]   ;;  %s169_s2 = inlined_call_operand.vmem [shape: f32[16,1], index: 2, kind: input, shape index: {}]   ;;  %s170_s3 = inlined_call_operand.vmem [shape: bf16[16,128], index: 3, kind: output, shape index: {}]  }
   0x1   :  { %117 = vmatprep.subr.bf16.mxu0 %v129_v0  ;;  %v127_v1 = vld [vmem:[%s167_s1] sm:$0xff]   ;;  %119 = vmatprep.mubr.msk.bf16.mxu0 %vm130_vm0, %v129_v0  ;;  %v20_v5 = vld [vmem:[%s169_s2 + $0x8] sm:$0xff] }
   0x2   :  { %v128_v2 = vld [vmem:[%s168_s0] sm:$0xff]   ;;  %126 = vset.pattern.permute.xlu0 %v131_v3  ;;  %118 = vmatpush3.bf16.msra.mxu0 %v127_v1 }
   0x3   :  { %v19_v4 = vld [vmem:[%s169_s2] sm:$0xff] }
   0x4   :  { %23 = vperm.xlu0 %126, %v19_v4  }
   0x5   :  { %120 = vmatmul.mubr.msk.bf16.vlgmr.msra.gmra.mrb[0].mxu0 %vm42_vm1, %v128_v2 }
   0x8   :  { %28 = vperm.xlu0 %126, %v20_v5  }
  0x83   :  { %v24_v6 = vpop.permute.xlu0 %23 }
  0x87   :  { %v29_v10 = vpop.permute.xlu0 %28 }
  0xd8   :  { %v80_v7 = vpop.f32.mrb[0].mxu0 }
  0xd9   :  { %v81_v8 = vadd.f32 %v80_v7, %v24_v6  ;;  %v121_v9 = vpop.f32.mrb[1].mxu0 }
  0xda   :  { %v83_v11 = vpop.f32.mrb[2].mxu0 }
  0xdb   :  { %v84_v12 = vadd.f32 %v83_v11, %v29_v10  ;;  %v122_v13 = vpop.f32.mrb[3].mxu0  ;;  %v87_v14 = vmax.f32 %v81_v8, 0.0 }
  0xdd   :  { %v88_v15 = vmax.f32 %v84_v12, 0.0 }
  0xdf   :  { %v113_v16 = vpack.c.bf16 %v88_v15, %v87_v14 }
  0xe1   :  { %114 = vst [vmem:[%s170_s3] sm:$0xff] %v113_v16  }

// kernel: cost_reg_net_2d.21
= control target key start
LH: loop header
LB: loop body
LE: loop exit
PB: predicated region body
PF: predicated region fallthrough
CT: control target
= control target key end

     0   :  { %s482_s12 = smov 0   ;;  %s484_s13 = smov 0   ;;  %s540_s0 = inlined_call_operand.vmem [shape: bf16[4,36], index: 0, kind: input, shape index: {}]   ;;  %s541_s1 = inlined_call_operand.vmem [shape: bf16[36,512], index: 1, kind: input, shape index: {}]   ;;  %s542_s2 = inlined_call_operand.vmem [shape: f32[4,1], index: 2, kind: input, shape index: {}]   ;;  %s543_s3 = inlined_call_operand.vmem [shape: f32[4,512], index: 3, kind: output, shape index: {}]  }
   0x1   :  { %s486_s14 = smov 0  }
   0x2 LB: > { %s381_s15 = sadd.s32 4294967295, %s459_s14   ;;  %s499_s16 = sadd.s32 1, %s459_s14   ;;  %s459_s14 = sphi %s486_s14, %s546_s14   ;;  %s455_s13 = sphi %s484_s13, %s545_s13   ;;  %s451_s12 = sphi %s482_s12, %s544_s12  }
   0x3   : > { %s38_s17 = ssub.s32 %s459_s14, %s499_s16  ;;  %s41_s18 = sadd.s32 1, %s455_s13 }
   0x4   : > { %p39_p0 = scmp.eq.s32.totalorder %s38_s17, 0  ;;  %p48_p1 = scmp.ne.s32.totalorder %s455_s13, %s451_s12 }
   0x5   : > { %p49_p2 = scmp.eq.s32.totalorder %s459_s14, 0  ;;  %p384_p4 = scmp.ge.s32.totalorder %s459_s14, 2 }
   0x6   : > { %s508_s19 = scalar_select %p39_p0, %s455_s13, %s41_s18  }
   0x7   : > { %p50_p3 = por %p49_p2, %p48_p1  ;;  %127 = sbr.rel (%p384_p4) target bundleno = 21 (0x15), region = 24 }
   0xe   : > { %130 = sbr.rel (!%p50_p3) target bundleno = 21 (0x15), region = 28  ;;  %s132_s20 = sand.u32 (%p50_p3), 1, %s455_s13  }
   0xf   : > { %s400_s21 = sshll.u32 (%p50_p3), %s459_s14, 3  ;;  %s401_s22 = smul.u32 (%p50_p3), 40, %s132_s20 }
  0x10   : > { %s137_s25 = scalar_lea.vmem (%p50_p3), %s541_s1, %s400_s21 }
  0x11   : > { %v173_v0 = vld [vmem:[%s137_s25] sm:$0xff] (%p50_p3)  ;;  %v175_v1 = vld [vmem:[%s137_s25 + $0x10] sm:$0xff] (%p50_p3)  ;;  %s134_s26 = scalar_lea.vmem (%p50_p3), [#allocation2], %s401_s22 }
  0x12   : > { %v177_v2 = vld [vmem:[%s137_s25 + $0x20] sm:$0xff] (%p50_p3)  ;;  %v179_v3 = vld [vmem:[%s137_s25 + $0x30] sm:$0xff] (%p50_p3)  ;;  %174 = vst [vmem:[%s134_s26] sm:$0xff] (%p50_p3), %v173_v0  ;;  %176 = vst [vmem:[%s134_s26 + $0x8] sm:$0xff] (%p50_p3), %v175_v1 }
  0x13   : > { %v181_v4 = vld [vmem:[%s137_s25 + $0x40] sm:$0xff] (%p50_p3)  ;;  %178 = vst [vmem:[%s134_s26 + $0x10] sm:$0xff] (%p50_p3), %v177_v2  ;;  %180 = vst [vmem:[%s134_s26 + $0x18] sm:$0xff] (%p50_p3), %v179_v3 }
  0x14   : > { %182 = vst [vmem:[%s134_s26 + $0x20] sm:$0xff] (%p50_p3), %v181_v4 }
  0x15 PF: > { %p387_p5 = scmp.ge.s32.totalorder %s459_s14, 1  ;;  %p187_p6 = scmp.lt.s32.totalorder %s459_s14, 3 }
  0x17   : > { %p188_p7 = pnand %p387_p5, %p187_p6 }
  0x18   : > { %s194_s27 = sand.u32 (!%p188_p7), 1, %s451_s12   ;;  %v461_v5 = vmov (!%p188_p7), 0   ;;  %v231_v6 = vld [vmem:[%s542_s2] sm:$0xf] (!%p188_p7)  ;;  %vm266_vm0 = vcmask (!%p188_p7), 1041408   ;;  %vm262_vm1 = vcmask (!%p188_p7), 293888  }
  0x19   : > { %191 = sbr.rel (%p188_p7) target bundleno = 260 (0x104), region = 66  ;;  %305 = vmatprep.mubr.bf16.mxu0 (!%p188_p7), %v461_v5  ;;  %428 = vset.pattern.permute.xlu0 (!%p188_p7), %v461_v5  ;;  %v225_v15 = vld [vmem:[%s540_s0] sm:$0x3] (!%p188_p7)  ;;  %s388_s7 = sshll.u32 (!%p188_p7), %s381_s15, 1 }
  0x1a   : > { %s402_s28 = smul.u32 (!%p188_p7), 40, %s194_s27  ;;  %234 = vperm.xlu0 (!%p188_p7), %428, %v231_v6   ;;  %p219_p8 = scmp.lt.s32.totalorder (!%p188_p7), %s388_s7, 3 }
  0x1c   : > { %s196_s4 = scalar_lea.vmem (!%p188_p7), [#allocation2], %s402_s28 }
  0x1d   : > { %v429_v7 = vld [vmem:[%s196_s4 + $0x4] ss:$8 sps:$4 sm:$0xff] (!%p188_p7)   ;;  %v431_v8 = vld [vmem:[%s196_s4] ss:$8 sps:$4 sm:$0xff] (!%p188_p7)   ;;  %v432_v9 = vld [vmem:[%s196_s4 + $0x14] ss:$8 sps:$4 sm:$0xff] (!%p188_p7)  }
  0x1e   : > { %273 = vmatprep.subr.bf16.mxu0 (!%p188_p7), %v429_v7  ;;  %v230_v10 = vld [vmem:[%s196_s4 + $0x20] sm:$0x33] (!%p188_p7)  ;;  %v434_v11 = vld [vmem:[%s196_s4 + $0x10] ss:$8 sps:$4 sm:$0xff] (!%p188_p7)  }
  0x1f   : > { %274 = vmatpush1.bf16.msra.mxu0 (!%p188_p7), %v431_v8  ;;  %v395_v12 = vcombine.high (!%p188_p7), %v230_v10, %v230_v10  ;;  %v394_v13 = vcombine.low (!%p188_p7), %v230_v10, %v230_v10 }
  0x20   : > { %275 = vmatprep.subr.bf16.mxu0 %v432_v9  ;;  %s548_s7 = smov (!%p219_p8, %s388_s7), 3 }
  0x21   : > { %v268_v14 = vsel %vm266_vm0, %v394_v13, 0  ;;  %s389_s8 = sshll.u32 %s548_s7, 2 }
  0x22   : > { %s222_s11 = scalar_lea.vmem %s543_s3, %s389_s8 }
  0x23   : > { %276 = vmatpush1.bf16.msra.mxu0 %v434_v11 }
  0x24   : > { %396 = vmatprep.subr.msk.bf16.mxu0 %vm266_vm0, %v395_v12 }
  0x27   : > { %278 = vmatpush1.bf16.msra.mxu0 %v268_v14 }
  0x2a   : > { %397 = vmatmul.mubr.msk.bf16.vlgmr.msra.gmra.mrb[0].mxu0 %vm262_vm1, %v225_v15 }
  0x99   : > { %v235_v16 = vpop.permute.xlu0 %234 }
  0xfd   : > { %v307_v17 = vpop.f32.mrb[0].mxu0 }
  0xfe   : > { %v308_v18 = vadd.f32 %v307_v17, %v235_v16  ;;  %v309_v19 = vpop.f32.mrb[1].mxu0 }
  0xff   : > { %v310_v20 = vadd.f32 %v309_v19, %v235_v16  ;;  %v311_v21 = vpop.f32.mrb[2].mxu0 }
 0x100   : > { %v312_v22 = vpop.f32.mrb[3].mxu0 }
 0x101   : > { %v316_v23 = vcombine.low %v308_v18, %v310_v20 }
 0x103   : > { %318 = vst [vmem:[%s222_s11] sm:$0xff] %v316_v23 }
 0x104 PF: > { %p10_p9 = scmp.ge.s32.totalorder %s499_s16, 4   ;;  %s544_s12 = smov %s455_s13 }
 0x105   : > { %s545_s13 = smov %s508_s19  ;;  %s546_s14 = smov %s499_s16 }
 0x106   :  { %12 = sbr.rel (!%p10_p9) target bundleno = 2 (0x2), region = 105 }

</bundles_post_ra>
